<compile_context>
chip_gen: v7x
topology: tpu7x:2x2x1
jax: 0.10.0
libtpu: 0.0.40
codegen_flags: <defaults>
</compile_context>

<pallas_src>
import jax
import jax.numpy as jnp
from jax.experimental import pallas as pl
from jax.experimental.pallas import tpu as pltpu

N = 8          # number of nodes
IN_DIM = 16
OUT_DIM = 8
NUM_HEADS = 3  # GATConv is hard-coded to 3 heads in the torch module
HD = NUM_HEADS * OUT_DIM         # 24
LANE = 128                       # vreg lane width; one 128-lane group per proj segment
SLAB_ROWS = N + IN_DIM + HD + 1  # 49

ROW_FEAT = 0                     # rows [0, 8)
ROW_W = N                        # rows [8, 24)
ROW_WFC = N + IN_DIM             # rows [24, 48)
ROW_BEFF = N + IN_DIM + HD       # row  48


def gat_kernel(s_ref, out_ref):
    """Single-invocation kernel producing the 2-logit output for node 0.

    s_ref : (49, 384) packed f32 slab (one DMA):
      rows [0,8)   lanes [0,16)     raw node features
      rows [0,8)   lanes [128,256)  additive mask bias for node 0
                                    (0 if adj[0,u] > 0 else -1e30, lane-replicated)
      rows [8,24)  lanes [0,24)=W, [128,152)=W_el_exp, [256,280)=W_er_exp, rest 0
      rows [24,48) lanes [0,2)      fc weight (HD, 2)
      row  48      lanes [0,2)      bg @ wfc + bfc
    out_ref : (1, 2)
    """
    x = s_ref[0:N, 0:IN_DIM]                                    # (8, 16)

    # torch.nn.functional.normalize(F, p=1, dim=0): per-column L1 norm.
    denom = jnp.maximum(jnp.sum(jnp.abs(x), axis=0, keepdims=True), 1e-12)
    x = x / denom

    # One MXU push: node projection + lane-expanded el / er attention terms.
    # Each segment owns a full 128-lane group, so the slices below are
    # whole-vreg (no XLU extraction).
    proj = jnp.dot(x, s_ref[ROW_W:ROW_W + IN_DIM, :],
                   preferred_element_type=jnp.float32)          # (8, 384)
    feat = proj[:, 0:LANE]               # (8,128)  lanes >= HD are exactly 0
    el   = proj[:, LANE:2 * LANE]        # (8,128)  el[u, h] replicated per head lane
    er0  = proj[0:1, 2 * LANE:3 * LANE]  # (1,128)  er[0, h] replicated per head lane

    # Attention for destination node 0 only (the only row the module consumes).
    logits = el + er0
    logits = jnp.maximum(logits, 0.2 * logits)                  # LeakyReLU(0.2)
    logits = logits + s_ref[0:N, LANE:2 * LANE]                 # additive -1e30 mask

    # edge_softmax over node 0's incoming edges (sublane axis). Masked entries
    # underflow to exactly 0 after exp, so no post-exp select is needed; this
    # relies on node 0 having >= 1 in-neighbour (self-loops are guaranteed).
    m = jnp.max(logits, axis=0, keepdims=True)                  # (1, 128)
    p = jnp.exp(logits - m)                                     # (8, 128)
    s = jnp.maximum(jnp.sum(p, axis=0, keepdims=True), 1e-12)
    alpha = p / s   # exact divide (approx reciprocal would risk the 1e-4 check)

    # Aggregation: alpha is already replicated per head lane -> pure VPU
    # multiply + sublane sum. Pad lanes contribute 0 (feat is 0 there).
    rst0 = jnp.sum(alpha * feat, axis=0, keepdims=True)         # (1, 128)

    # Final Linear(HD, 2); GATConv bias is pre-folded into the packed bias row.
    wfc = s_ref[ROW_WFC:ROW_WFC + HD, 0:2]                      # (24, 2)
    beff = s_ref[ROW_BEFF:ROW_BEFF + 1, 0:2]                    # (1, 2)
    out_ref[...] = (jnp.dot(rst0[:, 0:HD], wfc,
                            preferred_element_type=jnp.float32) + beff)


def pack_params(params):
    """Fold all GATConv / fc parameters into one lane-padded slab.

    Runs ONCE (params are static across forward calls); the jitted wrapper
    only splices per-call data (features + node-0 mask) into this slab, so
    every forward issues a single input DMA.
    """
    w, al, ar, bg, wfc, bfc = params
    # NOTE: assumes head-major fc.weight layout (reshape(IN_DIM, H, D)); this
    # matches DGL GATConv when importing real checkpoints.
    w3 = w.reshape(IN_DIM, NUM_HEADS, OUT_DIM)
    # el = (x @ w)_h . al_h  ==  x @ c_el  (linear fold); same for er.
    c_el = jnp.einsum('ihd,hd->ih', w3, al)                     # (IN_DIM, H)
    c_er = jnp.einsum('ihd,hd->ih', w3, ar)
    w_el = jnp.repeat(c_el, OUT_DIM, axis=1)                    # lane-expanded (IN_DIM, HD)
    w_er = jnp.repeat(c_er, OUT_DIM, axis=1)
    b_eff = bg @ wfc + bfc                                      # (1, 2)

    slab = jnp.zeros((SLAB_ROWS, 3 * LANE), jnp.float32)
    slab = slab.at[ROW_W:ROW_W + IN_DIM, 0:HD].set(w)
    slab = slab.at[ROW_W:ROW_W + IN_DIM, LANE:LANE + HD].set(w_el)
    slab = slab.at[ROW_W:ROW_W + IN_DIM, 2 * LANE:2 * LANE + HD].set(w_er)
    slab = slab.at[ROW_WFC:ROW_WFC + HD, 0:2].set(wfc)
    slab = slab.at[ROW_BEFF, 0:2].set(b_eff[0])
    return slab


@jax.jit
def gat_forward(feat, adj, param_slab):
    """Jitted forward. `param_slab` comes from pack_params (computed once)."""
    # Splice per-call data into the slab; these updates fuse into the same XLA
    # executable as the Pallas call (no extra eager dispatches).
    mask_bias = jnp.where(adj[0] > 0.0, 0.0, -1e30).astype(jnp.float32)   # (N,)
    mask_bias = jnp.broadcast_to(mask_bias[:, None], (N, LANE))
    slab = param_slab.at[0:N, 0:IN_DIM].set(feat.astype(jnp.float32))
    slab = slab.at[0:N, LANE:2 * LANE].set(mask_bias)

    # TODO(synk): to batch many graphs (and use v7x's 2nd TensorCore) add a
    # leading grid axis with dimension_semantics=("parallel",); for large N,
    # row-block feat/adj with BlockSpec tiles sized against per-gen VMEM.
    out = pl.pallas_call(
        gat_kernel,
        out_shape=jax.ShapeDtypeStruct((1, 2), jnp.float32),
        in_specs=[pl.BlockSpec(memory_space=pltpu.MemorySpace.VMEM)],
        out_specs=pl.BlockSpec(memory_space=pltpu.MemorySpace.VMEM),
    )(slab)
    return out[0]


def gat_reference(feat, adj, params):
    """Pure-JAX reference of the original (unoptimized) forward pass."""
    w, al, ar, bg, wfc, bfc = params
    x = feat.astype(jnp.float32)
    x = x / jnp.maximum(jnp.sum(jnp.abs(x), axis=0, keepdims=True), 1e-12)
    f = x @ w                                          # (N, H*D)
    f3 = f.reshape(N, NUM_HEADS, OUT_DIM)
    el = jnp.sum(f3 * al[None], axis=-1)               # (N, H)
    er = jnp.sum(f3 * ar[None], axis=-1)               # (N, H)
    logits = er[:, None, :] + el[None, :, :]           # (v, u, h)
    logits = jnp.where(logits >= 0, logits, 0.2 * logits)
    m = (adj > 0)[:, :, None]
    logits = jnp.where(m, logits, -1e30)
    logits = logits - jnp.max(logits, axis=1, keepdims=True)
    p = jnp.where(m, jnp.exp(logits), 0.0)
    alpha = p / jnp.maximum(jnp.sum(p, axis=1, keepdims=True), 1e-12)
    rst = jnp.einsum('vuh,uhd->vhd', alpha, f3).reshape(N, NUM_HEADS * OUT_DIM) + bg
    return rst[0] @ wfc + bfc[0]


if __name__ == "__main__":
    key = jax.random.PRNGKey(0)
    k_feat, k_adj, k_w, k_al, k_ar, k_wfc, k_bfc = jax.random.split(key, 7)

    # Node features and graph (dense in-adjacency, self-loops added so every
    # node has at least one incoming edge, as DGL GATConv requires).
    feat = jax.random.normal(k_feat, (N, IN_DIM), dtype=jnp.float32)
    adj = jax.random.bernoulli(k_adj, 0.4, (N, N)).astype(jnp.float32)
    adj = jnp.clip(adj + jnp.eye(N, dtype=jnp.float32), 0.0, 1.0)

    # Deterministic synthetic parameters (shapes follow DGL GATConv + nn.Linear).
    w = jax.random.normal(k_w, (IN_DIM, HD), dtype=jnp.float32) * 0.1            # fc.weight.T
    al = jax.random.normal(k_al, (NUM_HEADS, OUT_DIM), dtype=jnp.float32) * 0.1  # attn_l
    ar = jax.random.normal(k_ar, (NUM_HEADS, OUT_DIM), dtype=jnp.float32) * 0.1  # attn_r
    bg = jnp.zeros((1, HD), dtype=jnp.float32)                                   # GATConv bias
    wfc = jax.random.normal(k_wfc, (HD, 2), dtype=jnp.float32) * 0.1             # Linear.weight.T
    bfc = jax.random.normal(k_bfc, (1, 2), dtype=jnp.float32) * 0.1              # Linear.bias
    params = (w, al, ar, bg, wfc, bfc)

    param_slab = pack_params(params)        # hoisted: params are static per model
    out = gat_forward(feat, adj, param_slab)
    jax.block_until_ready(out)

    ref = gat_reference(feat, adj, params)
    assert out.shape == (2,)
    assert jnp.allclose(out, ref, atol=1e-4, rtol=1e-4), (out, ref)

    print("KERNEL_OK")
</pallas_src>

<mosaic_0001>
module attributes {stable_mosaic.version = 11 : i64} {
  func.func @gat_kernel(%arg0: memref<49x384xf32, #tpu.memory_space<vmem>>, %arg1: memref<1x2xf32, #tpu.memory_space<vmem>>) attributes {dimension_semantics = [], scalar_prefetch = 0 : i64, scratch_operands = 0 : i64, tpu.core_type = #tpu.core_type<tc>} {
    %c0 = arith.constant 0 : index
    %c0_0 = arith.constant 0 : index
    %0 = vector.load %arg0[%c0, %c0_0] : memref<49x384xf32, #tpu.memory_space<vmem>>, vector<8x16xf32>
    %1 = math.absf %0 : vector<8x16xf32>
    %cst = arith.constant dense<0.000000e+00> : vector<16xf32>
    %2 = vector.multi_reduction <add>, %1, %cst [0] : vector<8x16xf32> to vector<16xf32>
    %3 = vector.shape_cast %2 : vector<16xf32> to vector<1x16xf32>
    %cst_1 = arith.constant 9.99999996E-13 : f32
    %4 = vector.broadcast %cst_1 : f32 to vector<1x16xf32>
    %5 = arith.maximumf %3, %4 : vector<1x16xf32>
    %6 = vector.broadcast %5 : vector<1x16xf32> to vector<8x16xf32>
    %7 = arith.divf %0, %6 : vector<8x16xf32>
    %c8 = arith.constant 8 : index
    %c0_2 = arith.constant 0 : index
    %8 = vector.load %arg0[%c8, %c0_2] : memref<49x384xf32, #tpu.memory_space<vmem>>, vector<16x384xf32>
    %cst_3 = arith.constant dense<0.000000e+00> : vector<8x384xf32>
    %9 = tpu.matmul %7, %8, %cst_3 {dimension_numbers = #tpu.dot_dimension_numbers<[1], [0], [0], [1], [0, 0, 1, 1], [], []>} : vector<8x16xf32>, vector<16x384xf32>, vector<8x384xf32> -> vector<8x384xf32>
    %10 = vector.extract_strided_slice %9 {offsets = [0, 0], sizes = [8, 128], strides = [1, 1]} : vector<8x384xf32> to vector<8x128xf32>
    %11 = vector.extract_strided_slice %9 {offsets = [0, 128], sizes = [8, 128], strides = [1, 1]} : vector<8x384xf32> to vector<8x128xf32>
    %12 = vector.extract_strided_slice %9 {offsets = [0, 256], sizes = [1, 128], strides = [1, 1]} : vector<8x384xf32> to vector<1x128xf32>
    %13 = vector.broadcast %12 : vector<1x128xf32> to vector<8x128xf32>
    %14 = arith.addf %11, %13 : vector<8x128xf32>
    %cst_4 = arith.constant 2.000000e-01 : f32
    %15 = vector.broadcast %cst_4 : f32 to vector<8x128xf32>
    %16 = arith.mulf %15, %14 : vector<8x128xf32>
    %17 = arith.maximumf %14, %16 : vector<8x128xf32>
    %c0_5 = arith.constant 0 : index
    %c128 = arith.constant 128 : index
    %18 = vector.load %arg0[%c0_5, %c128] : memref<49x384xf32, #tpu.memory_space<vmem>>, vector<8x128xf32>
    %19 = arith.addf %17, %18 : vector<8x128xf32>
    %cst_6 = arith.constant dense<0xFF800000> : vector<128xf32>
    %20 = vector.multi_reduction <maximumf>, %19, %cst_6 [0] : vector<8x128xf32> to vector<128xf32>
    %21 = vector.shape_cast %20 : vector<128xf32> to vector<1x128xf32>
    %22 = vector.broadcast %21 : vector<1x128xf32> to vector<8x128xf32>
    %23 = arith.subf %19, %22 : vector<8x128xf32>
    %24 = math.exp %23 : vector<8x128xf32>
    %cst_7 = arith.constant dense<0.000000e+00> : vector<128xf32>
    %25 = vector.multi_reduction <add>, %24, %cst_7 [0] : vector<8x128xf32> to vector<128xf32>
    %26 = vector.shape_cast %25 : vector<128xf32> to vector<1x128xf32>
    %cst_8 = arith.constant 9.99999996E-13 : f32
    %27 = vector.broadcast %cst_8 : f32 to vector<1x128xf32>
    %28 = arith.maximumf %26, %27 : vector<1x128xf32>
    %29 = vector.broadcast %28 : vector<1x128xf32> to vector<8x128xf32>
    %30 = arith.divf %24, %29 : vector<8x128xf32>
    %31 = arith.mulf %30, %10 : vector<8x128xf32>
    %cst_9 = arith.constant dense<0.000000e+00> : vector<128xf32>
    %32 = vector.multi_reduction <add>, %31, %cst_9 [0] : vector<8x128xf32> to vector<128xf32>
    %33 = vector.shape_cast %32 : vector<128xf32> to vector<1x128xf32>
    %c24 = arith.constant 24 : index
    %c0_10 = arith.constant 0 : index
    %34 = vector.load %arg0[%c24, %c0_10] : memref<49x384xf32, #tpu.memory_space<vmem>>, vector<24x2xf32>
    %c48 = arith.constant 48 : index
    %c0_11 = arith.constant 0 : index
    %35 = vector.load %arg0[%c48, %c0_11] : memref<49x384xf32, #tpu.memory_space<vmem>>, vector<1x2xf32>
    %36 = vector.extract_strided_slice %33 {offsets = [0, 0], sizes = [1, 24], strides = [1, 1]} : vector<1x128xf32> to vector<1x24xf32>
    %cst_12 = arith.constant dense<0.000000e+00> : vector<1x2xf32>
    %37 = tpu.matmul %36, %34, %cst_12 {dimension_numbers = #tpu.dot_dimension_numbers<[1], [0], [0], [1], [0, 0, 1, 1], [], []>} : vector<1x24xf32>, vector<24x2xf32>, vector<1x2xf32> -> vector<1x2xf32>
    %38 = arith.addf %37, %35 : vector<1x2xf32>
    %c0_13 = arith.constant 0 : index
    %c0_14 = arith.constant 0 : index
    %39 = vector.load %arg1[%c0_13, %c0_14] : memref<1x2xf32, #tpu.memory_space<vmem>>, vector<1x2xf32>
    tpu.vector_store %arg1[%c0_13, %c0_14], %38 {strides = array<i32>} : memref<1x2xf32, #tpu.memory_space<vmem>>, vector<1x2xf32>,
    return
  }
}

</mosaic_0001>

<bundles_post_ra>
// kernel: gat_forward.1
= control target key start
LH: loop header
LB: loop body
LE: loop exit
PB: predicated region body
PF: predicated region fallthrough
CT: control target
= control target key end

     0   :  { %v370_v5 = vmov 0.0   ;;  %vm11_vm0 = vcmask 130048   ;;  %v371_v7 = vmov 0.0|0.0   ;;  %vm372_vm1 = vmmov 0   ;;  %s437_s0 = inlined_call_operand.vmem [shape: f32[49,384], index: 0, kind: input, shape index: {}]   ;;  %s438_s1 = inlined_call_operand.hbm [shape: f32[1,2], index: 1, kind: output, shape index: {}]  }
   0x1   :  { %v23_v0 = vld [vmem:[%s437_s0 + $0x20] sm:$0xff]  ;;  %v26_v1 = vld [vmem:[%s437_s0 + $0x38] sm:$0xff]  ;;  %v25_v4 = vld [vmem:[%s437_s0 + $0x30] sm:$0xff]  ;;  %95 = vmatprep.mubr.f32.mxu1 %v370_v5  ;;  %333 = vmatprep.subr.bf16.mxu0 %v371_v7 }
   0x2   :  { %v22_v2 = vld [vmem:[%s437_s0 + $0x18] sm:$0xff]  ;;  %v326_v3 = vpack.c.bf16 %v26_v1, %v23_v0  ;;  %v9_v6 = vld [vmem:[%s437_s0] sm:$0xff]  ;;  %323 = vmatprep.mubr.msk.f32.mxu0 %vm372_vm1, %v370_v5 }
   0x3   :  { %v328_v8 = vpack.c.bf16 %v25_v4, %v22_v2  ;;  %v10_v9 = vand.u32 2147483647, %v9_v6 }
   0x4   :  { %6 = vsyncpa [#allocation3], 0  ;;  %327 = vmatprep.subr.bf16.mxu1 %v326_v3  ;;  %v24_v18 = vld [vmem:[%s437_s0 + $0x28] sm:$0xff]  ;;  %v27_v19 = vld [vmem:[%s437_s0 + $0x40] sm:$0xff]  ;;  %v172_v27 = vlaneseq  ;;  %vm210_vm2 = vcmask 195584   ;;  %s373_s30 = smov [#allocation2]  }
   0x5   :  { %329 = vmatpush1.bf16.msra.mxu1 %v328_v8  ;;  %v12_v10 = vsel %vm11_vm0, %v10_v9, 0.0  ;;  %v331_v21 = vpack.c.bf16 %v27_v19, %v24_v18  ;;  %v206_v23 = vld [vmem:[%s437_s0 + $0x48] sm:$0xff]  ;;  %v207_v24 = vld [vmem:[%s437_s0 + $0x60] sm:$0xff]  ;;  %v208_v26 = vld [vmem:[%s437_s0 + $0x78] sm:$0xff]  ;;  %s292_s2 = sshll.u32 %s373_s30, 4  ;;  %vm284_vm3 = vcmask 8192   ;;  %s293_s2 = int_to_ptr.vmem [resolvable:$true] %s292_s2 }
   0x6   :  { %330 = vmatprep.subr.bf16.mxu1 %v371_v7  ;;  %v13_v11 = vrot.slane %v12_v10, 4  ;;  %v334_v25 = vpack.c.bf16 %v207_v24, %v206_v23  ;;  %v173_v28 = vshrl.u32 %v172_v27, 7  ;;  %v179_v37 = vld [vmem:[%s437_s0 + $0x8] sm:$0xff]  ;;  %v209_v1 = vld [vmem:[%s437_s0 + $0x90] ss:$0 sm:$0xff]  ;;  %s346_s3 = scalar_lea.vmem %s293_s2, 16  ;;  %p351_p1 = scmp.lt.s32.totalorder %s293_s2, %s293_s2 }
   0x7   :  { %p347_p0 = scmp.ne.s32.totalorder %s293_s2, %s346_s3  ;;  %s350_s4 = scalar_lea.vmem %s293_s2, 32 }
   0x8   :  { %v14_v12 = vadd.f32 %v13_v11, %v12_v10  ;;  %335 = vmatpush3.bf16.msra.mxu0 %v334_v25  ;;  %v174_v31 = vsub.s32 0, %v173_v28  ;;  %p352_p2 = scmp.lt.s32.totalorder %s350_s4, %s346_s3 }
   0x9   :  { %321 = vmatprep.subr.mxu0 %v370_v5 }
   0xa   :  { %v15_v13 = vrot.slane %v14_v12, 2  ;;  %p353_p3 = por %p352_p2, %p351_p1 }
   0xc   :  { %v16_v14 = vadd.f32 %v15_v13, %v14_v12  ;;  %322 = vmatpush3.msra.mxu0 %v208_v26  ;;  %p354_p4 = pnand %p353_p3, %p347_p0 }
   0xe   :  { %v17_v15 = vrot.slane %v16_v14, 1 }
  0x10   :  { %v18_v16 = vadd.f32 %v17_v15, %v16_v14 }
  0x12   :  { %v19_v17 = vmax.f32 %v18_v16, 1e-12 }
  0x14   :  { %340 = vrcp.f32 %v19_v17 }
  0x1e   :  { %v341_v20 = vpop.eup %340 }
  0x1f   :  { %v21_v22 = vmul.f32 %v341_v20, %v9_v6 }
  0x21   :  { %300 = vmatmul.mubr.msk.f32.vlgmr.msra.gmra.mrb[0].mxu1 %vm11_vm0, %v21_v22 }
  0x22   :  { %332 = vmatpush3.bf16.msra.mxu1 %v331_v21  ;;  %314 = vmatprep.mubr.msk.f32.mxu1 %vm372_vm1, %v370_v5 }
  0x25   :  { %315 = vmatmul.mubr.msk.f32.vlgmr.msra.gmra.mrb[2].mxu1 %vm11_vm0, %v21_v22 }
  0xf4   :  { %v97_v29 = vpop.f32.mrb[0].mxu1 }
  0xf5   :  { %v99_v30 = vpop.f32.mrb[1].mxu1 }
  0xf8   :  { %v168_v32 = vpop.f32.mrb[2].mxu1 }
  0xf9   :  { %v175_v33 = vrot.slane %v168_v32, %v174_v31  ;;  %v316_v34 = vpop.f32.mrb[3].mxu1 }
  0xfb   :  { %v176_v35 = vadd.f32 %v175_v33, %v99_v30 }
  0xfd   :  { %v177_v36 = vmul.f32 0.2, %v176_v35 }
  0xff   :  { %v178_v38 = vmax.f32 %v176_v35, %v177_v36 }
 0x101   :  { %v180_v39 = vadd.f32 %v179_v37, %v178_v38 }
 0x103   :  { %v181_v40 = vrot.slane %v180_v39, 4 }
 0x105   :  { %v182_v41 = vmax.f32 %v180_v39, %v181_v40 }
 0x107   :  { %v183_v42 = vrot.slane %v182_v41, 2 }
 0x109   :  { %v184_v43 = vmax.f32 %v182_v41, %v183_v42 }
 0x10b   :  { %v185_v44 = vrot.slane %v184_v43, 1 }
 0x10d   :  { %v186_v45 = vmax.f32 %v184_v43, %v185_v44 }
 0x10f   :  { %v187_v46 = vsub.f32 %v180_v39, %v186_v45 }
 0x111   :  { %v188_v47 = vmul.f32 1.442695, %v187_v46 }
 0x113   :  { %342 = vpow2.f32 %v188_v47 }
 0x11d   :  { %v343_v48 = vpop.eup %342 }
 0x11e   :  { %v190_v49 = vrot.slane %v343_v48, 4 }
 0x120   :  { %v191_v50 = vadd.f32 %v343_v48, %v190_v49 }
 0x122   :  { %v192_v51 = vrot.slane %v191_v50, 2 }
 0x124   :  { %v193_v52 = vadd.f32 %v192_v51, %v191_v50 }
 0x126   :  { %v194_v53 = vrot.slane %v193_v52, 1 }
 0x128   :  { %v195_v54 = vadd.f32 %v194_v53, %v193_v52 }
 0x12a   :  { %v196_v55 = vmax.f32 %v195_v54, 1e-12 }
 0x12c   :  { %344 = vrcp.f32 %v196_v55 }
 0x136   :  { %v345_v56 = vpop.eup %344 }
 0x137   :  { %v198_v57 = vmul.f32 %v345_v56, %v343_v48 }
 0x139   :  { %v199_v58 = vmul.f32 %v198_v57, %v97_v29 }
 0x13b   :  { %v200_v59 = vrot.slane %v199_v58, 4 }
 0x13d   :  { %v201_v60 = vadd.f32 %v200_v59, %v199_v58 }
 0x13f   :  { %v202_v61 = vrot.slane %v201_v60, 2 }
 0x141   :  { %v203_v62 = vadd.f32 %v202_v61, %v201_v60 }
 0x143   :  { %v204_v63 = vrot.slane %v203_v62, 1 }
 0x145   :  { %v205_v0 = vadd.f32 %v204_v63, %v203_v62 }
 0x147   :  { %324 = vmatmul.mubr.msk.f32.vlgmr.msra.gmra.mrb[0].mxu0 %vm210_vm2, %v205_v0 }
 0x21a   :  { %v280_v2 = vpop.f32.mrb[0].mxu0 }
 0x21b   :  { %v281_v3 = vadd.f32 %v280_v2, %v209_v1  ;;  %v325_v4 = vpop.f32.mrb[1].mxu0 }
 0x21d   :  { %285 = vst.msk [vmem:[#allocation2] sm:$0x1] %vm284_vm3, %v281_v3 }
 0x21e   :  { %357 = shalt.err (!%p354_p4)
}
 0x21f   :  { %s358_s0 = scalar_lea.hbm %s438_s1, 16 }
 0x220   :  { %p359_p5 = scmp.ne.s32.totalorder %s438_s1, %s358_s0  ;;  %p362_p6 = scmp.lt.u32.totalorder %s358_s0, %s438_s1 }
 0x222   :  { %p364_p7 = pnand %p362_p6, %p359_p5 }
 0x224   :  { %367 = shalt.err (!%p364_p7)
}
 0x225   :  { %295 = dma.vmem_to_hbm [thread:$0]  %s293_s2, 16, %s438_s1, [#allocation3]  }
 0x226   :  { %368 = dma.done.wait [#allocation3], 16  }
 0x227   :  { %369 = vsyncadd [#allocation3], 4294967280 }
 0x228   :  { %299 = vsyncpa [#allocation3], 1 }

</bundles_post_ra>
